<compile_context>
chip_gen: v7x
topology: tpu7x:2x2x1
jax: 0.10.0
libtpu: 0.0.40
codegen_flags: <defaults>
</compile_context>

<pallas_src>
import functools

import jax
import jax.numpy as jnp
from jax.experimental import pallas as pl
from jax.experimental.pallas import tpu as pltpu


def _round_up(a, b):
    return -(-a // b) * b


def _wce_kernel(x_ref, t_ref, w_ref, out_ref):
    """Per-row weighted NLL for one lane-dense row block.

    x_ref  : (Cp8, TN) logits (native dtype); classes on sublanes, rows on lanes.
             Padded class rows hold -1e30 so they never win the max / add to the sum.
    t_ref  : (1, TN) int32 targets (padded rows hold an arbitrary value; weight is 0).
    w_ref  : (1, TN) f32 per-row class weight, already 0 for ignored / padded rows.
    out_ref: (1, TN) f32  w[y] * (logsumexp(x) - x[y]).
    """
    x = x_ref[...].astype(jnp.float32)                       # (Cp8, TN)
    t = t_ref[...]                                           # (1, TN)
    w = w_ref[...]                                           # (1, TN)

    # Numerically stable logsumexp over the class (sublane) axis; row axis stays lane-dense.
    m = jnp.max(x, axis=0, keepdims=True)                    # (1, TN)
    s = jnp.sum(jnp.exp(x - m), axis=0, keepdims=True)       # (1, TN)
    lse = jnp.log(s) + m                                     # (1, TN)

    # Pick x[y] with a bool mask + select (no float one-hot, no multiplies).
    cls = jax.lax.broadcasted_iota(jnp.int32, x.shape, 0)    # (Cp8, TN)
    picked = jnp.sum(jnp.where(cls == t, x, 0.0), axis=0, keepdims=True)

    out_ref[...] = w * (lse - picked)


@functools.partial(jax.jit, static_argnames=("reduction", "block_rows"))
def weighted_cross_entropy(logits, targets, weight=None, reduction="mean",
                           block_rows=None):
    """Pallas-backed equivalent of WeightedCrossEntropyLoss.forward (tensor path)."""
    if logits.ndim == 3:
        B, S, C = logits.shape
        logits = logits.reshape(B * S, C)
        targets = targets.reshape(B * S)
    elif logits.ndim != 2:
        raise ValueError("inputs must be rank 2 or 3")
    N, C = logits.shape

    if weight is None:
        weight = jnp.ones((C,), jnp.float32)
    weight = jnp.asarray(weight, jnp.float32)
    if weight.shape != (C,):
        raise ValueError(f"weight must have shape ({C},), got {weight.shape}")

    # ---- wrapper-side O(N) preprocessing (gathers & masks are cheap XLA ops) -------------
    t = targets.astype(jnp.int32)
    # ignore_index=-100; other out-of-range targets are also treated as ignored
    # (PyTorch would raise -- documented behavioral divergence, not a numeric bug).
    valid = jnp.logical_and(t >= 0, t < C)
    w_row = jnp.where(valid, weight[jnp.clip(t, 0, C - 1)], 0.0)       # (N,) f32
    den = jnp.sum(w_row)

    # ---- tiling ---------------------------------------------------------------------------
    cp8 = _round_up(C, 8)                        # class axis padded to sublane multiple
    itemsize = jnp.dtype(logits.dtype).itemsize
    # Conservative VMEM cost per row-column: double-buffered native input + ~6 f32
    # full-tile intermediates + a handful of (1, TN) f32 row vectors.
    per_col = cp8 * (2 * itemsize + 24) + 64
    budget = 12 * 1024 * 1024                    # keep well under the 32 MiB limit below
    tn = (budget // per_col // 128) * 128
    tn = max(128, min(16384, tn))
    if block_rows is not None:                   # explicit override (testing / tuning)
        tn = max(128, _round_up(int(block_rows), 128))
    tn = min(tn, _round_up(N, 128))
    n_pad = _round_up(N, tn)
    nb = n_pad // tn

    # ---- lane-dense repack: (N, C) -> (Cp8, N_pad), rows on lanes, classes on sublanes ----
    # Padding value -1e30 is benign: never the max, exp underflows to 0, and padded row
    # columns end up multiplied by a 0 weight, so no NaN/Inf can leak into the sums.
    x_t = jnp.pad(jnp.transpose(logits),
                  ((0, cp8 - C), (0, n_pad - N)),
                  constant_values=-1e30)                                 # native dtype
    t2 = jnp.pad(t, (0, n_pad - N)).reshape(1, n_pad)
    w2 = jnp.pad(w_row, (0, n_pad - N)).reshape(1, n_pad)

    per_row = pl.pallas_call(
        _wce_kernel,
        out_shape=jax.ShapeDtypeStruct((1, n_pad), jnp.float32),
        grid=(nb,),
        in_specs=[
            pl.BlockSpec((cp8, tn), lambda i: (0, i)),   # logits, native dtype
            pl.BlockSpec((1, tn), lambda i: (0, i)),     # targets
            pl.BlockSpec((1, tn), lambda i: (0, i)),     # per-row weights
        ],
        out_specs=pl.BlockSpec((1, tn), lambda i: (0, i)),   # lane-dense per-row loss
        compiler_params=pltpu.CompilerParams(
            dimension_semantics=("parallel",),
            vmem_limit_bytes=32 * 1024 * 1024,
        ),
    )(x_t, t2, w2)[0]

    if reduction == "mean":
        return jnp.sum(per_row) / den          # NaN if every target ignored (matches PyTorch)
    elif reduction == "sum":
        return jnp.sum(per_row)
    elif reduction == "none":
        return per_row[:N]
    else:
        raise ValueError("reduction must be 'none', 'mean' or 'sum'")


def _reference(logits, targets, weight, reduction="mean"):
    """Pure-JAX reference mirroring F.cross_entropy(weight=..., ignore_index=-100)."""
    if logits.ndim == 3:
        B, S, C = logits.shape
        logits = logits.reshape(B * S, C)
        targets = targets.reshape(B * S)
    logits = logits.astype(jnp.float32)
    logp = jax.nn.log_softmax(logits, axis=-1)
    valid = targets != -100
    safe_t = jnp.where(valid, targets, 0)
    nll = -jnp.take_along_axis(logp, safe_t[:, None], axis=-1)[:, 0]
    w_t = weight[safe_t] * valid.astype(jnp.float32)
    per = nll * w_t
    if reduction == "none":
        return per
    num = jnp.sum(per)
    den = jnp.sum(w_t)
    return num / den if reduction == "mean" else num


if __name__ == "__main__":
    key = jax.random.PRNGKey(0)
    k1, k2, k3, k4, k5, k6 = jax.random.split(key, 6)

    num_classes = 5  # sleep stages: W, N1, N2, N3, REM
    class_weight = jnp.array([1.0, 1.5, 1.0, 2.0, 1.2], jnp.float32)

    # 3D case: [batch, seq, num_classes]
    batch, seq = 2, 8
    logits3 = jax.random.normal(k1, (batch, seq, num_classes), jnp.float32)
    targets3 = jax.random.randint(k2, (batch, seq), 0, num_classes, jnp.int32)
    loss3 = weighted_cross_entropy(logits3, targets3, class_weight, reduction="mean")
    jax.block_until_ready(loss3)
    ref3 = _reference(logits3, targets3, class_weight, reduction="mean")
    assert jnp.allclose(loss3, ref3, rtol=1e-5, atol=1e-5), (loss3, ref3)

    # 2D case: [batch, num_classes] with an ignored (-100) row
    logits2 = jax.random.normal(k3, (6, num_classes), jnp.float32)
    targets2 = jax.random.randint(k4, (6,), 0, num_classes, jnp.int32)
    targets2 = targets2.at[3].set(-100)
    loss2 = weighted_cross_entropy(logits2, targets2, class_weight, reduction="mean")
    jax.block_until_ready(loss2)
    ref2 = _reference(logits2, targets2, class_weight, reduction="mean")
    assert jnp.allclose(loss2, ref2, rtol=1e-5, atol=1e-5), (loss2, ref2)

    # Multi-block path: N=500 rows, forced 128-row blocks -> 4 grid steps with tail padding
    logits_m = jax.random.normal(k5, (4, 125, num_classes), jnp.float32)
    targets_m = jax.random.randint(k6, (4, 125), 0, num_classes, jnp.int32)
    targets_m = targets_m.at[0, 7].set(-100).at[3, 99].set(-100)
    for red in ("mean", "sum", "none"):
        got = weighted_cross_entropy(logits_m, targets_m, class_weight,
                                     reduction=red, block_rows=128)
        jax.block_until_ready(got)
        want = _reference(logits_m, targets_m, class_weight, reduction=red)
        assert jnp.allclose(got, want, rtol=1e-5, atol=1e-5), (red, got, want)

    # bf16 logits stay bf16 through the transpose/pad + kernel DMA; upcast to f32 in-kernel.
    logits_bf = logits_m.astype(jnp.bfloat16)
    got_bf = weighted_cross_entropy(logits_bf, targets_m, class_weight, reduction="mean")
    jax.block_until_ready(got_bf)
    want_bf = _reference(logits_bf.astype(jnp.float32), targets_m, class_weight, "mean")
    assert jnp.allclose(got_bf, want_bf, rtol=1e-3, atol=1e-3), (got_bf, want_bf)

    # weight=None path
    got_nw = weighted_cross_entropy(logits_m, targets_m, None, reduction="mean")
    jax.block_until_ready(got_nw)
    want_nw = _reference(logits_m, targets_m, jnp.ones((num_classes,), jnp.float32), "mean")
    assert jnp.allclose(got_nw, want_nw, rtol=1e-5, atol=1e-5), (got_nw, want_nw)

    print("KERNEL_OK")
</pallas_src>

<mosaic_0001>
module attributes {stable_mosaic.version = 11 : i64} {
  func.func @_wce_kernel(%arg0: i32, %arg1: memref<8x128xf32, #tpu.memory_space<vmem>>, %arg2: memref<1x128xi32, #tpu.memory_space<vmem>>, %arg3: memref<1x128xf32, #tpu.memory_space<vmem>>, %arg4: memref<1x128xf32, #tpu.memory_space<vmem>>) attributes {dimension_semantics = [#tpu.dimension_semantics<parallel>], iteration_bounds = array<i64: 1>, scalar_prefetch = 0 : i64, scratch_operands = 0 : i64, tpu.core_type = #tpu.core_type<tc>, window_params = [{transform_indices = @transform_0, window_bounds = array<i64: 8, 128>}, {transform_indices = @transform_1, window_bounds = array<i64: 1, 128>}, {transform_indices = @transform_2, window_bounds = array<i64: 1, 128>}, {transform_indices = @transform_3, window_bounds = array<i64: 1, 128>}]} {
    %c0 = arith.constant 0 : index
    %c0_0 = arith.constant 0 : index
    %0 = vector.load %arg1[%c0, %c0_0] : memref<8x128xf32, #tpu.memory_space<vmem>>, vector<8x128xf32>
    %c0_1 = arith.constant 0 : index
    %c0_2 = arith.constant 0 : index
    %1 = vector.load %arg2[%c0_1, %c0_2] : memref<1x128xi32, #tpu.memory_space<vmem>>, vector<1x128xi32>
    %c0_3 = arith.constant 0 : index
    %c0_4 = arith.constant 0 : index
    %2 = vector.load %arg3[%c0_3, %c0_4] : memref<1x128xf32, #tpu.memory_space<vmem>>, vector<1x128xf32>
    %cst = arith.constant dense<0xFF800000> : vector<128xf32>
    %3 = vector.multi_reduction <maximumf>, %0, %cst [0] : vector<8x128xf32> to vector<128xf32>
    %4 = vector.shape_cast %3 : vector<128xf32> to vector<1x128xf32>
    %5 = vector.broadcast %4 : vector<1x128xf32> to vector<8x128xf32>
    %6 = arith.subf %0, %5 : vector<8x128xf32>
    %7 = math.exp %6 : vector<8x128xf32>
    %cst_5 = arith.constant dense<0.000000e+00> : vector<128xf32>
    %8 = vector.multi_reduction <add>, %7, %cst_5 [0] : vector<8x128xf32> to vector<128xf32>
    %9 = vector.shape_cast %8 : vector<128xf32> to vector<1x128xf32>
    %10 = math.log %9 : vector<1x128xf32>
    %11 = arith.addf %10, %4 : vector<1x128xf32>
    %12 = tpu.iota {dimensions = array<i32: 0>} : vector<8x128xi32>
    %13 = vector.broadcast %1 : vector<1x128xi32> to vector<8x128xi32>
    %14 = arith.cmpi eq, %12, %13 : vector<8x128xi32>
    %cst_6 = arith.constant 0.000000e+00 : f32
    %15 = vector.broadcast %cst_6 : f32 to vector<8x128xf32>
    %16 = arith.select %14, %0, %15 : vector<8x128xi1>, vector<8x128xf32>
    %cst_7 = arith.constant dense<0.000000e+00> : vector<128xf32>
    %17 = vector.multi_reduction <add>, %16, %cst_7 [0] : vector<8x128xf32> to vector<128xf32>
    %18 = vector.shape_cast %17 : vector<128xf32> to vector<1x128xf32>
    %19 = arith.subf %11, %18 : vector<1x128xf32>
    %20 = arith.mulf %2, %19 : vector<1x128xf32>
    %c0_8 = arith.constant 0 : index
    %c0_9 = arith.constant 0 : index
    %21 = vector.load %arg4[%c0_8, %c0_9] : memref<1x128xf32, #tpu.memory_space<vmem>>, vector<1x128xf32>
    tpu.vector_store %arg4[%c0_8, %c0_9], %20 {strides = array<i32>} : memref<1x128xf32, #tpu.memory_space<vmem>>, vector<1x128xf32>,
    return
  }
  func.func @transform_0(%arg0: i32) -> (i32, i32) {
    %c0_i32 = arith.constant 0 : i32
    %c0_i32_0 = arith.constant 0 : i32
    return %c0_i32, %arg0 : i32, i32
  }
  func.func @transform_1(%arg0: i32) -> (i32, i32) {
    %c0_i32 = arith.constant 0 : i32
    %c0_i32_0 = arith.constant 0 : i32
    return %c0_i32, %arg0 : i32, i32
  }
  func.func @transform_2(%arg0: i32) -> (i32, i32) {
    %c0_i32 = arith.constant 0 : i32
    %c0_i32_0 = arith.constant 0 : i32
    return %c0_i32, %arg0 : i32, i32
  }
  func.func @transform_3(%arg0: i32) -> (i32, i32) {
    %c0_i32 = arith.constant 0 : i32
    %c0_i32_0 = arith.constant 0 : i32
    return %c0_i32, %arg0 : i32, i32
  }
}

</mosaic_0001>

<bundles_post_ra>
// kernel: weighted_cross_entropy.1
= control target key start
LH: loop header
LB: loop body
LE: loop exit
PB: predicated region body
PF: predicated region fallthrough
CT: control target
= control target key end

     0   :  { %v35_v9 = vlaneseq  ;;  %s93_s0 = inlined_call_operand.vmem [shape: f32[8,128], index: 0, kind: input, shape index: {}]   ;;  %s94_s1 = inlined_call_operand.vmem [shape: s32[1,128], index: 1, kind: input, shape index: {}]   ;;  %s95_s2 = inlined_call_operand.vmem [shape: f32[1,128], index: 2, kind: input, shape index: {}]   ;;  %s96_s3 = inlined_call_operand.vmem [shape: f32[1,128], index: 3, kind: output, shape index: {}]  }
   0x1   :  { %v14_v0 = vld [vmem:[%s93_s0] sm:$0xff] }
   0x2   :  { %v17_v1 = vrot.slane %v14_v0, 4  ;;  %v36_v10 = vshrl.u32 %v35_v9, 7  ;;  %v56_v11 = vld [vmem:[%s94_s1] ss:$0 sm:$0xff] }
   0x3   :  { %v16_v29 = vld [vmem:[%s95_s2] sm:$0x1] }
   0x4   :  { %v18_v2 = vmax.f32 %v14_v0, %v17_v1  ;;  %vm41_vm0 = vcmp.eq.s32.totalorder %v36_v10, %v56_v11 }
   0x5   :  { %v42_v14 = vsel %vm41_vm0, %v14_v0, 0.0 }
   0x6   :  { %v19_v3 = vrot.slane %v18_v2, 2  ;;  %v43_v16 = vrot.slane %v42_v14, 4 }
   0x8   :  { %v20_v4 = vmax.f32 %v18_v2, %v19_v3  ;;  %v44_v19 = vadd.f32 %v43_v16, %v42_v14 }
   0xa   :  { %v21_v5 = vrot.slane %v20_v4, 1  ;;  %v45_v22 = vrot.slane %v44_v19, 2 }
   0xc   :  { %v22_v6 = vmax.f32 %v20_v4, %v21_v5  ;;  %v46_v23 = vadd.f32 %v45_v22, %v44_v19 }
   0xe   :  { %v23_v7 = vsub.f32 %v14_v0, %v22_v6  ;;  %v47_v24 = vrot.slane %v46_v23, 1 }
  0x10   :  { %v24_v8 = vmul.f32 1.442695, %v23_v7  ;;  %v48_v27 = vadd.f32 %v47_v24, %v46_v23 }
  0x12   :  { %57 = vpow2.f32 %v24_v8 }
  0x1c   :  { %v58_v12 = vpop.eup %57 }
  0x1d   :  { %v26_v13 = vrot.slane %v58_v12, 4 }
  0x1f   :  { %v27_v15 = vadd.f32 %v58_v12, %v26_v13 }
  0x21   :  { %v28_v17 = vrot.slane %v27_v15, 2 }
  0x23   :  { %v29_v18 = vadd.f32 %v28_v17, %v27_v15 }
  0x25   :  { %v30_v20 = vrot.slane %v29_v18, 1 }
  0x27   :  { %v31_v21 = vadd.f32 %v30_v20, %v29_v18 }
  0x29   :  { %59 = vlog2.f32 %v31_v21 }
  0x33   :  { %v60_v25 = vpop.eup %59 }
  0x34   :  { %v33_v26 = vmul.f32 0.6931472, %v60_v25 }
  0x36   :  { %v34_v28 = vadd.f32 %v33_v26, %v22_v6 }
  0x38   :  { %v49_v30 = vsub.f32 %v34_v28, %v48_v27 }
  0x3a   :  { %v50_v31 = vmul.f32 %v49_v30, %v16_v29 }
  0x3c   :  { %51 = vst [vmem:[%s96_s3] sm:$0x1] %v50_v31 }

</bundles_post_ra>
